<compile_context>
chip_gen: v7x
topology: tpu7x:2x2x1
jax: 0.10.0
libtpu: 0.0.40
codegen_flags: <defaults>
</compile_context>

<pallas_src>
import math

import jax
import jax.numpy as jnp
from jax.experimental import pallas as pl
from jax.experimental.pallas import tpu as pltpu


# ---------------------------------------------------------------------------
# Kernel: per-tile identity copy (the only "compute" a materialized view has).
# ---------------------------------------------------------------------------
def _view_copy_kernel(x_ref, o_ref):
    o_ref[...] = x_ref[...]


_PER_BUFFER_BUDGET = 4 << 20   # 4 MiB per block: ~85%+ of HBM roofline on a
                               # pure copy; conservative for v7x's 64 MiB VMEM.


def _packed_sublane(itemsize):
    # Sub-32-bit dtypes pack along sublanes: f32 -> 8, bf16 -> 16, int8 -> 32.
    return max(8, 32 // itemsize)


def _pick_lane_width(total, itemsize):
    """Largest lane-dense (multiple-of-128) width dividing `total` that still
    leaves at least one packed-sublane group of rows.  None if no multiple of
    128 divides `total` (fallback copies at the output shape)."""
    sub = _packed_sublane(itemsize)
    candidates = [c for c in (4096, 2048, 1024, 512, 256, 128) if total % c == 0]
    if not candidates:
        return None
    for c in candidates:                # widest first
        if total // c >= sub:
            return c
    return candidates[0]                # tiny inputs: just take the widest


def _choose_tile_rows(rows, row_bytes, itemsize):
    """Sublane-aligned row tile that (a) fits the per-buffer budget, (b) leaves
    >=2 grid steps when possible (v7x has 2 TensorCores on the 'parallel'
    axis), and (c) prefers a divisor of `rows` to avoid a masked ragged tile."""
    sub = _packed_sublane(itemsize)
    if rows <= sub:
        return rows                                  # single full-dim block
    cap = max(sub, (_PER_BUFFER_BUDGET // max(1, row_bytes)) // sub * sub)
    # Cap at ~half the rows (sublane-rounded) so the grid has >=2 steps.
    half = (rows + 1) // 2
    two_way = ((half + sub - 1) // sub) * sub
    cap = min(cap, two_way)
    if cap >= rows:
        return rows
    # Prefer a divisor of rows (no masked partial final tile) without more
    # than doubling the step count.
    t = cap
    floor = max(sub, cap // 2)
    while t >= floor:
        if rows % t == 0:
            return t
        t -= sub
    return cap


def view_forward(x, num_feat, *, materialize=True):
    """Equivalent of torch `x.view(-1, num_feat)` on a contiguous tensor.

    materialize=False: true zero-copy behavior (free metadata reshape in XLA),
    exactly what torch's .view does.  materialize=True: tiled Pallas copy that
    returns a freshly materialized (m, num_feat) buffer.
    """
    total = int(math.prod(x.shape))
    if total % num_feat != 0:
        raise ValueError(f"total elements {total} not divisible by numFeat={num_feat}")
    m = total // num_feat

    if not materialize:
        # Top perf-review item: the view is a free metadata reshape.
        return jnp.reshape(x, (m, num_feat))

    itemsize = jnp.dtype(x.dtype).itemsize

    # Decouple copy tiling from num_feat: lane-dense slab (rows, cols) with
    # cols a multiple of 128, then a free reshape to (m, num_feat) afterwards.
    lane_width = _pick_lane_width(total, itemsize)
    if lane_width is None:
        # No multiple-of-128 factor of `total`: copy at the output shape itself.
        # Full-dim blocks are always legal; Pallas masks the trailing lanes.
        # TODO(synk): extremely wide non-128-divisible rows could exceed VMEM;
        # not reachable for normal View workloads.
        rows, cols = m, num_feat
    else:
        rows, cols = total // lane_width, lane_width

    x2 = jnp.reshape(x, (rows, cols))             # free metadata reshape
    tm = _choose_tile_rows(rows, cols * itemsize, itemsize)
    grid_rows = pl.cdiv(rows, tm)

    block_bytes = tm * cols * itemsize
    # in + out, double-buffered, plus headroom; clamp to v7x's 64 MiB physical.
    vmem_limit = min(max(32 << 20, 4 * block_bytes + (4 << 20)), 64 << 20)

    out2 = pl.pallas_call(
        _view_copy_kernel,
        out_shape=jax.ShapeDtypeStruct((rows, cols), x.dtype),
        grid=(grid_rows,),
        in_specs=[pl.BlockSpec((tm, cols), lambda i: (i, 0))],
        out_specs=pl.BlockSpec((tm, cols), lambda i: (i, 0)),
        compiler_params=pltpu.CompilerParams(
            dimension_semantics=("parallel",),    # independent tiles -> v7x 2-TC shard
            vmem_limit_bytes=vmem_limit,
        ),
        cost_estimate=pl.CostEstimate(
            flops=0,
            transcendentals=0,
            bytes_accessed=2 * total * itemsize,  # read + write, native dtype
        ),
    )(x2)

    # TODO(synk): a true zero-copy view has no Pallas equivalent; this path
    # materializes the reshaped tensor (use materialize=False for metadata-only).
    return jnp.reshape(out2, (m, num_feat))


if __name__ == "__main__":
    key = jax.random.PRNGKey(0)

    # 1) Typical View usage: flatten per-sample features before a classifier.
    N, C, H, W = 2, 4, 16, 16
    num_feat = C * H * W                          # -> output (2, 1024)
    x = jax.random.normal(key, (N, C, H, W), dtype=jnp.float32)
    out = view_forward(x, num_feat)
    jax.block_until_ready(out)
    ref = jnp.reshape(x, (-1, num_feat))
    assert out.shape == (N, num_feat) and out.dtype == x.dtype
    assert jnp.array_equal(out, ref)

    # 2) Native bf16 path (packed sublanes), different view shape.
    x16 = jax.random.normal(key, (4, 8, 8, 8), dtype=jnp.bfloat16)
    out16 = view_forward(x16, 128)                # 2048 elems -> (16, 128)
    jax.block_until_ready(out16)
    assert out16.dtype == jnp.bfloat16
    assert jnp.array_equal(out16, jnp.reshape(x16, (-1, 128)))

    # 3) numFeat not a multiple of 128 and no 128-factor in the element count:
    #    exercises the full-dim fallback path (still exact).
    x3 = jax.random.normal(key, (6, 5, 5), dtype=jnp.float32)   # 150 elems
    out3 = view_forward(x3, 25)                   # -> (6, 25)
    jax.block_until_ready(out3)
    assert jnp.array_equal(out3, jnp.reshape(x3, (-1, 25)))

    # 4) Zero-copy path (the review's top recommendation).
    out0 = view_forward(x, num_feat, materialize=False)
    jax.block_until_ready(out0)
    assert jnp.array_equal(out0, ref)

    print("KERNEL_OK")
</pallas_src>

<mosaic_0001>
module attributes {stable_mosaic.version = 11 : i64} {
  func.func @_view_copy_kernel(%arg0: i32, %arg1: memref<8x256xf32, #tpu.memory_space<vmem>>, %arg2: memref<8x256xf32, #tpu.memory_space<vmem>>) attributes {dimension_semantics = [#tpu.dimension_semantics<parallel>], iteration_bounds = array<i64: 1>, scalar_prefetch = 0 : i64, scratch_operands = 0 : i64, tpu.core_type = #tpu.core_type<tc>, window_params = [{transform_indices = @transform_0, window_bounds = array<i64: 8, 256>}, {transform_indices = @transform_1, window_bounds = array<i64: 8, 256>}]} {
    %c0 = arith.constant 0 : index
    %c0_0 = arith.constant 0 : index
    %0 = vector.load %arg1[%c0, %c0_0] : memref<8x256xf32, #tpu.memory_space<vmem>>, vector<8x256xf32>
    %c0_1 = arith.constant 0 : index
    %c0_2 = arith.constant 0 : index
    %1 = vector.load %arg2[%c0_1, %c0_2] : memref<8x256xf32, #tpu.memory_space<vmem>>, vector<8x256xf32>
    tpu.vector_store %arg2[%c0_1, %c0_2], %0 {strides = array<i32>} : memref<8x256xf32, #tpu.memory_space<vmem>>, vector<8x256xf32>,
    return
  }
  func.func @transform_0(%arg0: i32) -> (i32, i32) {
    %c0_i32 = arith.constant 0 : i32
    %c0_i32_0 = arith.constant 0 : i32
    return %arg0, %c0_i32 : i32, i32
  }
  func.func @transform_1(%arg0: i32) -> (i32, i32) {
    %c0_i32 = arith.constant 0 : i32
    %c0_i32_0 = arith.constant 0 : i32
    return %arg0, %c0_i32 : i32, i32
  }
}

</mosaic_0001>

<bundles_post_ra>
// kernel: tpu_custom_call.1
= control target key start
LH: loop header
LB: loop body
LE: loop exit
PB: predicated region body
PF: predicated region fallthrough
CT: control target
= control target key end

     0   :  { %6 = vsyncpa [#allocation3], 0  ;;  %s126_s0 = inlined_call_operand.hbm [shape: f32[8,256], index: 0, kind: input, shape index: {}]   ;;  %s127_s1 = inlined_call_operand.hbm [shape: f32[8,256], index: 1, kind: output, shape index: {}]  }
   0x1   :  { %7 = vsyncpa [#allocation4], 0  ;;  %s90_s6 = smov [#allocation2]   ;;  %s42_s10 = scalar_lea.hbm %s126_s0, 256 }
   0x2   :  { %s14_s7 = sshll.u32 %s90_s6, 4  ;;  %p43_p0 = scmp.ne.s32.totalorder %s126_s0, %s42_s10  ;;  %s15_s7 = int_to_ptr.vmem [resolvable:$true] %s14_s7 }
   0x3   :  { %p46_p1 = scmp.lt.u32.totalorder %s42_s10, %s126_s0 }
   0x5   :  { %p48_p2 = pnand %p46_p1, %p43_p0 }
   0x7   :  { %51 = shalt.err (!%p48_p2)
}
   0x8   :  { %s52_s15 = scalar_lea.vmem %s15_s7, 256  ;;  %p57_p4 = scmp.lt.s32.totalorder %s15_s7, %s15_s7 }
   0x9   :  { %p53_p3 = scmp.ne.s32.totalorder %s15_s7, %s52_s15  ;;  %p58_p5 = scmp.lt.s32.totalorder %s52_s15, %s52_s15 }
   0xb   :  { %p59_p6 = por %p58_p5, %p57_p4 }
   0xd   :  { %p60_p7 = pnand %p59_p6, %p53_p3 }
   0xf   :  { %63 = shalt.err (!%p60_p7)
}
  0x10   :  { %17 = dma.hbm_to_vmem [thread:$0]  %s126_s0, 256, %s15_s7, [#allocation3]  }
  0x11   :  { %86 = dma.done.wait [#allocation3], 256  }
  0x12   :  { %87 = vsyncadd [#allocation3], 4294967040  ;;  %s91_s18 = smov [#allocation5]   ;;  %v21_v0 = vld [vmem:[#allocation2] sm:$0xff]  ;;  %v22_v1 = vld [vmem:[#allocation2 + $0x8] sm:$0xff] }
  0x13   :  { %s31_s19 = sshll.u32 %s91_s18, 4  ;;  %23 = vst [vmem:[#allocation5] sm:$0xff] %v21_v0  ;;  %24 = vst [vmem:[#allocation5 + $0x8] sm:$0xff] %v22_v1  ;;  %s32_s19 = int_to_ptr.vmem [resolvable:$true] %s31_s19 }
  0x14   :  { %s64_s20 = scalar_lea.vmem %s32_s19, 256  ;;  %p69_p9 = scmp.lt.s32.totalorder %s32_s19, %s32_s19 }
  0x15   :  { %p65_p8 = scmp.ne.s32.totalorder %s32_s19, %s64_s20  ;;  %p70_p10 = scmp.lt.s32.totalorder %s64_s20, %s64_s20 }
  0x17   :  { %p71_p11 = por %p70_p10, %p69_p9 }
  0x19   :  { %p72_p12 = pnand %p71_p11, %p65_p8 }
  0x1b   :  { %75 = shalt.err (!%p72_p12)
}
  0x1c   :  { %s76_s0 = scalar_lea.hbm %s127_s1, 256 }
  0x1d   :  { %p77_p13 = scmp.ne.s32.totalorder %s127_s1, %s76_s0  ;;  %p80_p0 = scmp.lt.u32.totalorder %s76_s0, %s127_s1 }
  0x1f   :  { %p82_p1 = pnand %p80_p0, %p77_p13 }
  0x21   :  { %85 = shalt.err (!%p82_p1)
}
  0x22   :  { %34 = dma.vmem_to_hbm [thread:$0]  %s32_s19, 256, %s127_s1, [#allocation4]  }
  0x23   :  { %88 = dma.done.wait [#allocation4], 256  }
  0x24   :  { %89 = vsyncadd [#allocation4], 4294967040 }
  0x25   :  { %38 = vsyncpa [#allocation3], 1 }
  0x26   :  { %39 = vsyncpa [#allocation4], 1 }

</bundles_post_ra>
